<compile_context>
chip_gen: v7x
topology: tpu7x:2x2x1
jax: 0.10.0
libtpu: 0.0.40
codegen_flags: <defaults>
</compile_context>

<pallas_src>
import functools

import jax
import jax.numpy as jnp
from jax.experimental import pallas as pl
from jax.experimental.pallas import tpu as pltpu

NUM_LAYERS = 6
LANE = 128


def _round_up(n, m):
    return (n + m - 1) // m * m


def mlp_kernel(x_ref, w_ref, b_ref, o_ref, *, num_layers):
    """One batch tile through all 6 layers on VMEM-resident data.

    x_ref: (tb, Dp)  f32    streamed batch tile (zero-padded lanes)
    w_ref: (L, Dp, Dp)      packed zero-padded weights (bf16 or f32), resident
    b_ref: (Lp, Dp)  f32    packed zero-padded biases, resident
    o_ref: (tb, Dp)  f32    lane-dense padded output tile
    """
    h = x_ref[...]                      # f32 activations
    b_all = b_ref[...]                  # tiny, load the whole slab once
    for i in range(num_layers):
        w = w_ref[i]                    # (Dp, Dp) — VMEM-resident across grid steps
        # MXU matmul: operands in w.dtype (bf16 by default), accumulate in f32.
        h = jnp.dot(h.astype(w.dtype), w, preferred_element_type=jnp.float32)
        # Bias + ReLU in f32 on the VPU.  ReLU after EVERY layer incl. fc6 (per spec).
        h = jnp.maximum(h + b_all[i][None, :], 0.0)
        # dropout layers are identity at inference time.
    o_ref[...] = h.astype(o_ref.dtype)


def pack_params(params, matmul_dtype=jnp.bfloat16):
    """Pack [(W(in,out), b(out,)) x 6] into two lane-padded slabs.  Call ONCE."""
    dims = []
    for w, _ in params:
        dims.extend(int(d) for d in w.shape)
    dp = max(_round_up(d, LANE) for d in dims)
    num_layers = len(params)
    w_slab = jnp.zeros((num_layers, dp, dp), matmul_dtype)
    b_slab = jnp.zeros((_round_up(num_layers, 8), dp), jnp.float32)
    for i, (w, b) in enumerate(params):
        w_slab = w_slab.at[i, : w.shape[0], : w.shape[1]].set(w.astype(matmul_dtype))
        b_slab = b_slab.at[i, : b.shape[0]].set(b.astype(jnp.float32))
    return w_slab, b_slab


@functools.partial(jax.jit, static_argnames=("num_layers", "out_dim", "block_batch"))
def mlp_forward(x, w_slab, b_slab, *, out_dim, num_layers=NUM_LAYERS, block_batch=512):
    """x: (batch, input_dim); w_slab/b_slab from pack_params (pre-converted, hoisted)."""
    batch, in_dim = x.shape
    dp = w_slab.shape[-1]

    tb = min(block_batch, _round_up(batch, 8))       # batch tile, multiple of 8 rows
    batch_p = _round_up(batch, tb)

    x_p = jnp.zeros((batch_p, dp), jnp.float32).at[:batch, :in_dim].set(
        x.astype(jnp.float32))

    out_p = pl.pallas_call(
        functools.partial(mlp_kernel, num_layers=num_layers),
        out_shape=jax.ShapeDtypeStruct((batch_p, dp), jnp.float32),
        grid=(batch_p // tb,),
        in_specs=[
            pl.BlockSpec((tb, dp), lambda i: (i, 0)),                 # x: streamed tiles
            pl.BlockSpec((num_layers, dp, dp), lambda i: (0, 0, 0)),  # weights: resident
            pl.BlockSpec((b_slab.shape[0], dp), lambda i: (0, 0)),    # biases: resident
        ],
        out_specs=pl.BlockSpec((tb, dp), lambda i: (i, 0)),           # lane-dense store
        compiler_params=pltpu.CompilerParams(
            dimension_semantics=("parallel",)),                        # 2 TCs on v7x
    )(x_p, w_slab, b_slab)

    return out_p[:batch, :out_dim]


def xavier_uniform(key, fan_in, fan_out):
    limit = jnp.sqrt(6.0 / (fan_in + fan_out))
    return jax.random.uniform(key, (fan_in, fan_out), jnp.float32, -limit, limit)


def init_params(key, input_dim, hidden_dim1, hidden_dim2, output_dim):
    # Stored as (in_features, out_features) so y = x @ W + b (== PyTorch Linear w/ W.T).
    dims = [
        (input_dim, hidden_dim1),    # fc1
        (hidden_dim1, hidden_dim1),  # fc2
        (hidden_dim1, hidden_dim2),  # fc3
        (hidden_dim2, hidden_dim2),  # fc4
        (hidden_dim2, hidden_dim2),  # fc5
        (hidden_dim2, output_dim),   # fc6
    ]
    keys = jax.random.split(key, len(dims))
    params = []
    for k, (fi, fo) in zip(keys, dims):
        params.append((xavier_uniform(k, fi, fo), jnp.zeros((fo,), jnp.float32)))
    return params


def reference_forward(x, params):
    h = x.astype(jnp.float32)
    for w, b in params:                    # ReLU after every layer incl. fc6; dropout = id
        h = jnp.maximum(h @ w + b, 0.0)
    return h


if __name__ == "__main__":
    input_dim, hidden_dim1, hidden_dim2, output_dim = 16, 32, 32, 8
    batch = 8

    key = jax.random.PRNGKey(0)
    kx, kp = jax.random.split(key)
    x = jax.random.normal(kx, (batch, input_dim), jnp.float32)
    params = init_params(kp, input_dim, hidden_dim1, hidden_dim2, output_dim)

    ref = reference_forward(x, params)

    # f32-operand path: bit-faithful to the PyTorch forward, tight tolerance.
    w32, b32 = pack_params(params, matmul_dtype=jnp.float32)
    out_f32 = jax.block_until_ready(mlp_forward(x, w32, b32, out_dim=output_dim))
    assert out_f32.shape == (batch, output_dim)
    assert jnp.allclose(out_f32, ref, atol=1e-5, rtol=1e-5)

    # bf16-operand path (the perf default for v6e/v7x MXU), f32 accumulate — loose tol.
    wbf, bbf = pack_params(params, matmul_dtype=jnp.bfloat16)
    out_bf16 = jax.block_until_ready(mlp_forward(x, wbf, bbf, out_dim=output_dim))
    assert out_bf16.shape == (batch, output_dim)
    assert jnp.allclose(out_bf16, ref, atol=5e-2, rtol=5e-2)

    print("KERNEL_OK")
</pallas_src>

<mosaic_0001>
module attributes {stable_mosaic.version = 11 : i64} {
  func.func @mlp_kernel(%arg0: i32, %arg1: memref<8x128xf32, #tpu.memory_space<vmem>>, %arg2: memref<6x128x128xf32, #tpu.memory_space<vmem>>, %arg3: memref<8x128xf32, #tpu.memory_space<vmem>>, %arg4: memref<8x128xf32, #tpu.memory_space<vmem>>) attributes {dimension_semantics = [#tpu.dimension_semantics<parallel>], iteration_bounds = array<i64: 1>, scalar_prefetch = 0 : i64, scratch_operands = 0 : i64, tpu.core_type = #tpu.core_type<tc>, window_params = [{transform_indices = @transform_0, window_bounds = array<i64: 8, 128>}, {pipeline_mode = #tpu.pipeline_mode<synchronous>, transform_indices = @transform_1, window_bounds = array<i64: 6, 128, 128>}, {pipeline_mode = #tpu.pipeline_mode<synchronous>, transform_indices = @transform_2, window_bounds = array<i64: 8, 128>}, {transform_indices = @transform_3, window_bounds = array<i64: 8, 128>}]} {
    %c0 = arith.constant 0 : index
    %c0_0 = arith.constant 0 : index
    %0 = vector.load %arg1[%c0, %c0_0] : memref<8x128xf32, #tpu.memory_space<vmem>>, vector<8x128xf32>
    %c0_1 = arith.constant 0 : index
    %c0_2 = arith.constant 0 : index
    %1 = vector.load %arg3[%c0_1, %c0_2] : memref<8x128xf32, #tpu.memory_space<vmem>>, vector<8x128xf32>
    %c0_3 = arith.constant 0 : index
    %c0_4 = arith.constant 0 : index
    %c0_5 = arith.constant 0 : index
    %2 = vector.load %arg2[%c0_3, %c0_4, %c0_5] : memref<6x128x128xf32, #tpu.memory_space<vmem>>, vector<1x128x128xf32>
    %3 = vector.shape_cast %2 : vector<1x128x128xf32> to vector<128x128xf32>
    %cst = arith.constant dense<0.000000e+00> : vector<8x128xf32>
    %4 = tpu.matmul %0, %3, %cst {dimension_numbers = #tpu.dot_dimension_numbers<[1], [0], [0], [1], [0, 0, 1, 1], [], []>} : vector<8x128xf32>, vector<128x128xf32>, vector<8x128xf32> -> vector<8x128xf32>
    %5 = vector.extract_strided_slice %1 {offsets = [0, 0], sizes = [1, 128], strides = [1, 1]} : vector<8x128xf32> to vector<1x128xf32>
    %6 = vector.shape_cast %5 : vector<1x128xf32> to vector<128xf32>
    %7 = vector.shape_cast %6 : vector<128xf32> to vector<1x128xf32>
    %8 = vector.broadcast %7 : vector<1x128xf32> to vector<8x128xf32>
    %9 = arith.addf %4, %8 : vector<8x128xf32>
    %cst_6 = arith.constant 0.000000e+00 : f32
    %10 = vector.broadcast %cst_6 : f32 to vector<8x128xf32>
    %11 = arith.maximumf %9, %10 : vector<8x128xf32>
    %c1 = arith.constant 1 : index
    %c0_7 = arith.constant 0 : index
    %c0_8 = arith.constant 0 : index
    %12 = vector.load %arg2[%c1, %c0_7, %c0_8] : memref<6x128x128xf32, #tpu.memory_space<vmem>>, vector<1x128x128xf32>
    %13 = vector.shape_cast %12 : vector<1x128x128xf32> to vector<128x128xf32>
    %cst_9 = arith.constant dense<0.000000e+00> : vector<8x128xf32>
    %14 = tpu.matmul %11, %13, %cst_9 {dimension_numbers = #tpu.dot_dimension_numbers<[1], [0], [0], [1], [0, 0, 1, 1], [], []>} : vector<8x128xf32>, vector<128x128xf32>, vector<8x128xf32> -> vector<8x128xf32>
    %15 = vector.extract_strided_slice %1 {offsets = [1, 0], sizes = [1, 128], strides = [1, 1]} : vector<8x128xf32> to vector<1x128xf32>
    %16 = vector.shape_cast %15 : vector<1x128xf32> to vector<128xf32>
    %17 = vector.shape_cast %16 : vector<128xf32> to vector<1x128xf32>
    %18 = vector.broadcast %17 : vector<1x128xf32> to vector<8x128xf32>
    %19 = arith.addf %14, %18 : vector<8x128xf32>
    %cst_10 = arith.constant 0.000000e+00 : f32
    %20 = vector.broadcast %cst_10 : f32 to vector<8x128xf32>
    %21 = arith.maximumf %19, %20 : vector<8x128xf32>
    %c2 = arith.constant 2 : index
    %c0_11 = arith.constant 0 : index
    %c0_12 = arith.constant 0 : index
    %22 = vector.load %arg2[%c2, %c0_11, %c0_12] : memref<6x128x128xf32, #tpu.memory_space<vmem>>, vector<1x128x128xf32>
    %23 = vector.shape_cast %22 : vector<1x128x128xf32> to vector<128x128xf32>
    %cst_13 = arith.constant dense<0.000000e+00> : vector<8x128xf32>
    %24 = tpu.matmul %21, %23, %cst_13 {dimension_numbers = #tpu.dot_dimension_numbers<[1], [0], [0], [1], [0, 0, 1, 1], [], []>} : vector<8x128xf32>, vector<128x128xf32>, vector<8x128xf32> -> vector<8x128xf32>
    %25 = vector.extract_strided_slice %1 {offsets = [2, 0], sizes = [1, 128], strides = [1, 1]} : vector<8x128xf32> to vector<1x128xf32>
    %26 = vector.shape_cast %25 : vector<1x128xf32> to vector<128xf32>
    %27 = vector.shape_cast %26 : vector<128xf32> to vector<1x128xf32>
    %28 = vector.broadcast %27 : vector<1x128xf32> to vector<8x128xf32>
    %29 = arith.addf %24, %28 : vector<8x128xf32>
    %cst_14 = arith.constant 0.000000e+00 : f32
    %30 = vector.broadcast %cst_14 : f32 to vector<8x128xf32>
    %31 = arith.maximumf %29, %30 : vector<8x128xf32>
    %c3 = arith.constant 3 : index
    %c0_15 = arith.constant 0 : index
    %c0_16 = arith.constant 0 : index
    %32 = vector.load %arg2[%c3, %c0_15, %c0_16] : memref<6x128x128xf32, #tpu.memory_space<vmem>>, vector<1x128x128xf32>
    %33 = vector.shape_cast %32 : vector<1x128x128xf32> to vector<128x128xf32>
    %cst_17 = arith.constant dense<0.000000e+00> : vector<8x128xf32>
    %34 = tpu.matmul %31, %33, %cst_17 {dimension_numbers = #tpu.dot_dimension_numbers<[1], [0], [0], [1], [0, 0, 1, 1], [], []>} : vector<8x128xf32>, vector<128x128xf32>, vector<8x128xf32> -> vector<8x128xf32>
    %35 = vector.extract_strided_slice %1 {offsets = [3, 0], sizes = [1, 128], strides = [1, 1]} : vector<8x128xf32> to vector<1x128xf32>
    %36 = vector.shape_cast %35 : vector<1x128xf32> to vector<128xf32>
    %37 = vector.shape_cast %36 : vector<128xf32> to vector<1x128xf32>
    %38 = vector.broadcast %37 : vector<1x128xf32> to vector<8x128xf32>
    %39 = arith.addf %34, %38 : vector<8x128xf32>
    %cst_18 = arith.constant 0.000000e+00 : f32
    %40 = vector.broadcast %cst_18 : f32 to vector<8x128xf32>
    %41 = arith.maximumf %39, %40 : vector<8x128xf32>
    %c4 = arith.constant 4 : index
    %c0_19 = arith.constant 0 : index
    %c0_20 = arith.constant 0 : index
    %42 = vector.load %arg2[%c4, %c0_19, %c0_20] : memref<6x128x128xf32, #tpu.memory_space<vmem>>, vector<1x128x128xf32>
    %43 = vector.shape_cast %42 : vector<1x128x128xf32> to vector<128x128xf32>
    %cst_21 = arith.constant dense<0.000000e+00> : vector<8x128xf32>
    %44 = tpu.matmul %41, %43, %cst_21 {dimension_numbers = #tpu.dot_dimension_numbers<[1], [0], [0], [1], [0, 0, 1, 1], [], []>} : vector<8x128xf32>, vector<128x128xf32>, vector<8x128xf32> -> vector<8x128xf32>
    %45 = vector.extract_strided_slice %1 {offsets = [4, 0], sizes = [1, 128], strides = [1, 1]} : vector<8x128xf32> to vector<1x128xf32>
    %46 = vector.shape_cast %45 : vector<1x128xf32> to vector<128xf32>
    %47 = vector.shape_cast %46 : vector<128xf32> to vector<1x128xf32>
    %48 = vector.broadcast %47 : vector<1x128xf32> to vector<8x128xf32>
    %49 = arith.addf %44, %48 : vector<8x128xf32>
    %cst_22 = arith.constant 0.000000e+00 : f32
    %50 = vector.broadcast %cst_22 : f32 to vector<8x128xf32>
    %51 = arith.maximumf %49, %50 : vector<8x128xf32>
    %c5 = arith.constant 5 : index
    %c0_23 = arith.constant 0 : index
    %c0_24 = arith.constant 0 : index
    %52 = vector.load %arg2[%c5, %c0_23, %c0_24] : memref<6x128x128xf32, #tpu.memory_space<vmem>>, vector<1x128x128xf32>
    %53 = vector.shape_cast %52 : vector<1x128x128xf32> to vector<128x128xf32>
    %cst_25 = arith.constant dense<0.000000e+00> : vector<8x128xf32>
    %54 = tpu.matmul %51, %53, %cst_25 {dimension_numbers = #tpu.dot_dimension_numbers<[1], [0], [0], [1], [0, 0, 1, 1], [], []>} : vector<8x128xf32>, vector<128x128xf32>, vector<8x128xf32> -> vector<8x128xf32>
    %55 = vector.extract_strided_slice %1 {offsets = [5, 0], sizes = [1, 128], strides = [1, 1]} : vector<8x128xf32> to vector<1x128xf32>
    %56 = vector.shape_cast %55 : vector<1x128xf32> to vector<128xf32>
    %57 = vector.shape_cast %56 : vector<128xf32> to vector<1x128xf32>
    %58 = vector.broadcast %57 : vector<1x128xf32> to vector<8x128xf32>
    %59 = arith.addf %54, %58 : vector<8x128xf32>
    %cst_26 = arith.constant 0.000000e+00 : f32
    %60 = vector.broadcast %cst_26 : f32 to vector<8x128xf32>
    %61 = arith.maximumf %59, %60 : vector<8x128xf32>
    %c0_27 = arith.constant 0 : index
    %c0_28 = arith.constant 0 : index
    %62 = vector.load %arg4[%c0_27, %c0_28] : memref<8x128xf32, #tpu.memory_space<vmem>>, vector<8x128xf32>
    tpu.vector_store %arg4[%c0_27, %c0_28], %61 {strides = array<i32>} : memref<8x128xf32, #tpu.memory_space<vmem>>, vector<8x128xf32>,
    return
  }
  func.func @transform_0(%arg0: i32) -> (i32, i32) {
    %c0_i32 = arith.constant 0 : i32
    %c0_i32_0 = arith.constant 0 : i32
    return %arg0, %c0_i32 : i32, i32
  }
  func.func @transform_1(%arg0: i32) -> (i32, i32, i32) {
    %c0_i32 = arith.constant 0 : i32
    %c0_i32_0 = arith.constant 0 : i32
    %c0_i32_1 = arith.constant 0 : i32
    %c0_i32_2 = arith.constant 0 : i32
    return %c0_i32, %c0_i32_0, %c0_i32_1 : i32, i32, i32
  }
  func.func @transform_2(%arg0: i32) -> (i32, i32) {
    %c0_i32 = arith.constant 0 : i32
    %c0_i32_0 = arith.constant 0 : i32
    %c0_i32_1 = arith.constant 0 : i32
    return %c0_i32, %c0_i32_0 : i32, i32
  }
  func.func @transform_3(%arg0: i32) -> (i32, i32) {
    %c0_i32 = arith.constant 0 : i32
    %c0_i32_0 = arith.constant 0 : i32
    return %arg0, %c0_i32 : i32, i32
  }
}

</mosaic_0001>

<bundles_post_ra>
// kernel: mlp_forward.1
= control target key start
LH: loop header
LB: loop body
LE: loop exit
PB: predicated region body
PF: predicated region fallthrough
CT: control target
= control target key end

     0   :  { %8 = vsyncpa [#allocation3], 0  ;;  %s1242_s0 = inlined_call_operand.vmem [shape: f32[8,128], index: 0, kind: input, shape index: {}]   ;;  %s1243_s1 = inlined_call_operand.hbm [shape: f32[6,128,128], index: 1, kind: input, shape index: {}]   ;;  %s1244_s2 = inlined_call_operand.vmem [shape: f32[8,128], index: 2, kind: input, shape index: {}]   ;;  %s1245_s3 = inlined_call_operand.hbm [shape: f32[8,128], index: 3, kind: output, shape index: {}]  }
   0x1   :  { %9 = vsyncpa [#allocation4], 0  ;;  %s1109_s12 = smov [#allocation2]   ;;  %s1061_s16 = scalar_lea.hbm %s1243_s1, 12288 }
   0x2   :  { %s17_s13 = sshll.u32 %s1109_s12, 4  ;;  %p1062_p0 = scmp.ne.s32.totalorder %s1243_s1, %s1061_s16  ;;  %s18_s13 = int_to_ptr.vmem [resolvable:$true] %s17_s13 }
   0x3   :  { %p1065_p1 = scmp.lt.u32.totalorder %s1061_s16, %s1243_s1 }
   0x5   :  { %p1067_p2 = pnand %p1065_p1, %p1062_p0 }
   0x7   :  { %1070 = shalt.err (!%p1067_p2)
}
   0x8   :  { %s1071_s21 = scalar_lea.vmem %s18_s13, 12288  ;;  %p1076_p4 = scmp.lt.s32.totalorder %s18_s13, %s18_s13 }
   0x9   :  { %p1072_p3 = scmp.ne.s32.totalorder %s18_s13, %s1071_s21  ;;  %p1077_p5 = scmp.lt.s32.totalorder %s1071_s21, %s1071_s21 }
   0xb   :  { %p1078_p6 = por %p1077_p5, %p1076_p4 }
   0xd   :  { %p1079_p7 = pnand %p1078_p6, %p1072_p3 }
   0xf   :  { %1082 = shalt.err (!%p1079_p7)
}
  0x10   :  { %s1110_s22 = smov 128   ;;  %s1111_s23 = smov 8  }
  0x11   :  { %23 = dma.hbm_to_vmem [thread:$0]  %s1243_s1, 12288, %s18_s13, [#allocation3], %s1110_s22, %s1110_s22, %s1111_s23  }
  0x12   :  { %1105 = dma.done.wait [#allocation3], 12288  }
  0x13   :  { %1106 = vsyncadd [#allocation3], 4294955008  ;;  %v1112_v0 = vmov 0.0|0.0   ;;  %vm1113_vm0 = vmmov 0   ;;  %v1114_v1 = vmov 0.0   ;;  %v31_v2 = vld [vmem:[#allocation2] sm:$0xff] }
  0x14   :  { %910 = vmatprep.subr.bf16.mxu0 %v1112_v0  ;;  %732 = vmatprep.mubr.msk.f32.mxu0 %vm1113_vm0, %v1114_v1  ;;  %v32_v3 = vld [vmem:[#allocation2 + $0x8] sm:$0xff]  ;;  %v33_v4 = vld [vmem:[#allocation2 + $0x10] sm:$0xff]  ;;  %v34_v6 = vld [vmem:[#allocation2 + $0x18] sm:$0xff] }
  0x15   :  { %934 = vmatprep.subr.bf16.mxu1 %v1112_v0  ;;  %767 = vmatprep.mubr.msk.f32.mxu1 %vm1113_vm0, %v1114_v1  ;;  %v911_v5 = vpack.c.bf16 %v32_v3, %v31_v2  ;;  %v914_v7 = vpack.c.bf16 %v34_v6, %v33_v4  ;;  %v35_v8 = vld [vmem:[#allocation2 + $0x20] sm:$0xff]  ;;  %v36_v9 = vld [vmem:[#allocation2 + $0x28] sm:$0xff]  ;;  %v125_v12 = vld [vmem:[#allocation2 + $0x90] sm:$0xff] }
  0x16   :  { %v123_v10 = vld [vmem:[#allocation2 + $0x80] sm:$0xff]  ;;  %v124_v11 = vld [vmem:[#allocation2 + $0x88] sm:$0xff]  ;;  %v126_v13 = vld [vmem:[#allocation2 + $0x98] sm:$0xff]  ;;  %v917_v14 = vpack.c.bf16 %v36_v9, %v35_v8 }
  0x17   :  { %912 = vmatpush3.bf16.msra.mxu0 %v911_v5  ;;  %v935_v15 = vpack.c.bf16 %v124_v11, %v123_v10  ;;  %v37_v16 = vld [vmem:[#allocation2 + $0x30] sm:$0xff]  ;;  %v38_v17 = vld [vmem:[#allocation2 + $0x38] sm:$0xff]  ;;  %v938_v18 = vpack.c.bf16 %v126_v13, %v125_v12  ;;  %v127_v19 = vld [vmem:[#allocation2 + $0xa0] sm:$0xff]  ;;  %v47_v10 = vlaneseq }
  0x18   :  { %913 = vmatprep.subr.bf16.mxu0 %v1112_v0  ;;  %v128_v20 = vld [vmem:[#allocation2 + $0xa8] sm:$0xff]  ;;  %v920_v21 = vpack.c.bf16 %v38_v17, %v37_v16  ;;  %v39_v22 = vld [vmem:[#allocation2 + $0x40] sm:$0xff]  ;;  %v129_v25 = vld [vmem:[#allocation2 + $0xb0] sm:$0xff] }
  0x19   :  { %936 = vmatpush3.bf16.msra.mxu1 %v935_v15  ;;  %v40_v23 = vld [vmem:[#allocation2 + $0x48] sm:$0xff]  ;;  %v941_v24 = vpack.c.bf16 %v128_v20, %v127_v19  ;;  %v130_v26 = vld [vmem:[#allocation2 + $0xb8] sm:$0xff]  ;;  %v41_v28 = vld [vmem:[#allocation2 + $0x50] sm:$0xff]  ;;  %v1182_v11 = vshrl.u32 %v47_v10, 7 }
  0x1a   :  { %937 = vmatprep.subr.bf16.mxu1 %v1112_v0  ;;  %v923_v27 = vpack.c.bf16 %v40_v23, %v39_v22  ;;  %v42_v29 = vld [vmem:[#allocation2 + $0x58] sm:$0xff]  ;;  %v944_v30 = vpack.c.bf16 %v130_v26, %v129_v25  ;;  %v131_v31 = vld [vmem:[#allocation2 + $0xc0] sm:$0xff]  ;;  %v132_v32 = vld [vmem:[#allocation2 + $0xc8] sm:$0xff] }
  0x1b   :  { %915 = vmatpush3.bf16.msra.mxu0 %v914_v7  ;;  %v926_v33 = vpack.c.bf16 %v42_v29, %v41_v28  ;;  %v43_v34 = vld [vmem:[#allocation2 + $0x60] sm:$0xff]  ;;  %v44_v35 = vld [vmem:[#allocation2 + $0x68] sm:$0xff]  ;;  %v947_v36 = vpack.c.bf16 %v132_v32, %v131_v31  ;;  %v133_v37 = vld [vmem:[#allocation2 + $0xd0] sm:$0xff]  ;;  %v49_v12 = vsub.s32 0, %v1182_v11 }
  0x1c   :  { %916 = vmatprep.subr.bf16.mxu0 %v1112_v0  ;;  %v134_v38 = vld [vmem:[#allocation2 + $0xd8] sm:$0xff]  ;;  %v929_v39 = vpack.c.bf16 %v44_v35, %v43_v34  ;;  %v45_v40 = vld [vmem:[#allocation2 + $0x70] sm:$0xff]  ;;  %v135_v43 = vld [vmem:[#allocation2 + $0xe0] sm:$0xff] }
  0x1d   :  { %939 = vmatpush3.bf16.msra.mxu1 %v938_v18  ;;  %v46_v41 = vld [vmem:[#allocation2 + $0x78] sm:$0xff]  ;;  %v950_v42 = vpack.c.bf16 %v134_v38, %v133_v37  ;;  %v136_v44 = vld [vmem:[#allocation2 + $0xe8] sm:$0xff]  ;;  %v29_v47 = vld [vmem:[%s1242_s0] sm:$0xff] }
  0x1e   :  { %940 = vmatprep.subr.bf16.mxu1 %v1112_v0  ;;  %v932_v45 = vpack.c.bf16 %v46_v41, %v45_v40  ;;  %v953_v46 = vpack.c.bf16 %v136_v44, %v135_v43  ;;  %v137_v48 = vld [vmem:[#allocation2 + $0xf0] sm:$0xff]  ;;  %v138_v49 = vld [vmem:[#allocation2 + $0xf8] sm:$0xff]  ;;  %v215_v51 = vld [vmem:[#allocation2 + $0x100] sm:$0xff]  ;;  %v141_v43 = vsub.s32 1, %v1182_v11 }
  0x1f   :  { %918 = vmatpush3.bf16.msra.mxu0 %v917_v14  ;;  %v956_v50 = vpack.c.bf16 %v138_v49, %v137_v48  ;;  %v216_v52 = vld [vmem:[#allocation2 + $0x108] sm:$0xff]  ;;  %v217_v53 = vld [vmem:[#allocation2 + $0x110] sm:$0xff]  ;;  %v218_v55 = vld [vmem:[#allocation2 + $0x118] sm:$0xff] }
  0x20   :  { %919 = vmatprep.subr.bf16.mxu0 %v1112_v0  ;;  %v959_v54 = vpack.c.bf16 %v216_v52, %v215_v51  ;;  %v962_v56 = vpack.c.bf16 %v218_v55, %v217_v53  ;;  %v219_v57 = vld [vmem:[#allocation2 + $0x120] sm:$0xff]  ;;  %v220_v58 = vld [vmem:[#allocation2 + $0x128] sm:$0xff]  ;;  %v221_v60 = vld [vmem:[#allocation2 + $0x130] sm:$0xff] }
  0x21   :  { %942 = vmatpush3.bf16.msra.mxu1 %v941_v24  ;;  %v965_v59 = vpack.c.bf16 %v220_v58, %v219_v57  ;;  %v222_v61 = vld [vmem:[#allocation2 + $0x138] sm:$0xff]  ;;  %v223_v63 = vld [vmem:[#allocation2 + $0x140] sm:$0xff]  ;;  %v224_v2 = vld [vmem:[#allocation2 + $0x148] sm:$0xff] }
  0x22   :  { %943 = vmatprep.subr.bf16.mxu1 %v1112_v0  ;;  %v968_v62 = vpack.c.bf16 %v222_v61, %v221_v60  ;;  %v971_v3 = vpack.c.bf16 %v224_v2, %v223_v63  ;;  %v225_v4 = vld [vmem:[#allocation2 + $0x150] sm:$0xff]  ;;  %v226_v5 = vld [vmem:[#allocation2 + $0x158] sm:$0xff]  ;;  %v227_v7 = vld [vmem:[#allocation2 + $0x160] sm:$0xff] }
  0x23   :  { %921 = vmatpush3.bf16.msra.mxu0 %v920_v21  ;;  %v974_v6 = vpack.c.bf16 %v226_v5, %v225_v4  ;;  %v228_v8 = vld [vmem:[#allocation2 + $0x168] sm:$0xff]  ;;  %v1188_v13 = vld [vmem:[%s1244_s2] sm:$0xff]  ;;  %v229_v19 = vld [vmem:[#allocation2 + $0x170] sm:$0xff]  ;;  %s1115_s2 = smov [#allocation5]  }
  0x24   :  { %922 = vmatprep.subr.bf16.mxu0 %v1112_v0  ;;  %v977_v9 = vpack.c.bf16 %v228_v8, %v227_v7  ;;  %v50_v14 = vrot.slane %v1188_v13, %v49_v12  ;;  %v230_v20 = vld [vmem:[#allocation2 + $0x178] sm:$0xff]  ;;  %v307_v22 = vld [vmem:[#allocation2 + $0x180] sm:$0xff]  ;;  %v308_v23 = vld [vmem:[#allocation2 + $0x188] sm:$0xff]  ;;  %v142_v44 = vrot.slane %v1188_v13, %v141_v43  ;;  %v233_v12 = vsub.s32 2, %v1182_v11  ;;  %s589_s28 = sshll.u32 %s1115_s2, 4  ;;  %s590_s28 = int_to_ptr.vmem [resolvable:$true] %s589_s28 }
  0x25   :  { %945 = vmatpush3.bf16.msra.mxu1 %v944_v30  ;;  %v980_v21 = vpack.c.bf16 %v230_v20, %v229_v19  ;;  %v309_v24 = vld [vmem:[#allocation2 + $0x190] sm:$0xff]  ;;  %v983_v25 = vpack.c.bf16 %v308_v23, %v307_v22  ;;  %v310_v26 = vld [vmem:[#allocation2 + $0x198] sm:$0xff]  ;;  %v311_v28 = vld [vmem:[#allocation2 + $0x1a0] sm:$0xff]  ;;  %s1083_s29 = scalar_lea.vmem %s590_s28, 128  ;;  %p1088_p9 = scmp.lt.s32.totalorder %s590_s28, %s590_s28 }
  0x26   :  { %946 = vmatprep.subr.bf16.mxu1 %v1112_v0  ;;  %v312_v29 = vld [vmem:[#allocation2 + $0x1a8] sm:$0xff]  ;;  %v313_v31 = vld [vmem:[#allocation2 + $0x1b0] sm:$0xff]  ;;  %v314_v32 = vld [vmem:[#allocation2 + $0x1b8] sm:$0xff]  ;;  %p1084_p8 = scmp.ne.s32.totalorder %s590_s28, %s1083_s29  ;;  %p1089_p10 = scmp.lt.s32.totalorder %s1083_s29, %s1083_s29 }
  0x27   :  { %924 = vmatpush3.bf16.msra.mxu0 %v923_v27  ;;  %v986_v27 = vpack.c.bf16 %v310_v26, %v309_v24  ;;  %v989_v30 = vpack.c.bf16 %v312_v29, %v311_v28  ;;  %v315_v34 = vld [vmem:[#allocation2 + $0x1c0] sm:$0xff]  ;;  %v316_v35 = vld [vmem:[#allocation2 + $0x1c8] sm:$0xff]  ;;  %v317_v37 = vld [vmem:[#allocation2 + $0x1d0] sm:$0xff] }
  0x28   :  { %925 = vmatprep.subr.bf16.mxu0 %v1112_v0  ;;  %v318_v38 = vld [vmem:[#allocation2 + $0x1d8] sm:$0xff]  ;;  %v319_v40 = vld [vmem:[#allocation2 + $0x1e0] sm:$0xff]  ;;  %v320_v41 = vld [vmem:[#allocation2 + $0x1e8] sm:$0xff]  ;;  %p1090_p11 = por %p1089_p10, %p1088_p9 }
  0x29   :  { %948 = vmatpush3.bf16.msra.mxu1 %v947_v36  ;;  %v995_v36 = vpack.c.bf16 %v316_v35, %v315_v34  ;;  %v321_v49 = vld [vmem:[#allocation2 + $0x1f0] sm:$0xff]  ;;  %v399_v52 = vld [vmem:[#allocation2 + $0x200] sm:$0xff]  ;;  %v400_v53 = vld [vmem:[#allocation2 + $0x208] sm:$0xff] }
  0x2a   :  { %949 = vmatprep.subr.bf16.mxu1 %v1112_v0  ;;  %v1007_v55 = vpack.c.bf16 %v400_v53, %v399_v52  ;;  %v403_v58 = vld [vmem:[#allocation2 + $0x220] sm:$0xff]  ;;  %v405_v61 = vld [vmem:[#allocation2 + $0x230] sm:$0xff]  ;;  %v414_v20 = vld [vmem:[#allocation2 + $0x278] sm:$0xff]  ;;  %p1091_p12 = pnand %p1090_p11, %p1084_p8 }
  0x2b   :  { %927 = vmatpush3.bf16.msra.mxu0 %v926_v33  ;;  %v992_v33 = vpack.c.bf16 %v314_v32, %v313_v31  ;;  %v407_v2 = vld [vmem:[#allocation2 + $0x240] sm:$0xff]  ;;  %v409_v5 = vld [vmem:[#allocation2 + $0x250] sm:$0xff]  ;;  %v492_v23 = vld [vmem:[#allocation2 + $0x288] sm:$0xff] }
  0x2c   :  { %928 = vmatprep.subr.bf16.mxu0 %v1112_v0  ;;  %v411_v8 = vld [vmem:[#allocation2 + $0x260] sm:$0xff]  ;;  %v413_v19 = vld [vmem:[#allocation2 + $0x270] sm:$0xff]  ;;  %v494_v26 = vld [vmem:[#allocation2 + $0x298] sm:$0xff] }
  0x2d   :  { %951 = vmatpush3.bf16.msra.mxu1 %v950_v42  ;;  %v1001_v42 = vpack.c.bf16 %v320_v41, %v319_v40  ;;  %v491_v22 = vld [vmem:[#allocation2 + $0x280] sm:$0xff]  ;;  %v493_v24 = vld [vmem:[#allocation2 + $0x290] sm:$0xff]  ;;  %v496_v29 = vld [vmem:[#allocation2 + $0x2a8] sm:$0xff] }
  0x2e   :  { %952 = vmatprep.subr.bf16.mxu1 %v1112_v0  ;;  %v495_v28 = vld [vmem:[#allocation2 + $0x2a0] sm:$0xff]  ;;  %v498_v31 = vld [vmem:[#allocation2 + $0x2b8] sm:$0xff]  ;;  %v500_v34 = vld [vmem:[#allocation2 + $0x2c8] sm:$0xff] }
  0x2f   :  { %930 = vmatpush3.bf16.msra.mxu0 %v929_v39  ;;  %v998_v39 = vpack.c.bf16 %v318_v38, %v317_v37  ;;  %v502_v37 = vld [vmem:[#allocation2 + $0x2d8] sm:$0xff]  ;;  %v504_v40 = vld [vmem:[#allocation2 + $0x2e8] sm:$0xff] }
  0x30   :  { %931 = vmatprep.subr.bf16.mxu0 %v1112_v0 }
  0x31   :  { %954 = vmatpush3.bf16.msra.mxu1 %v953_v46 }
  0x32   :  { %955 = vmatprep.subr.bf16.mxu1 %v1112_v0 }
  0x33   :  { %933 = vmatpush3.bf16.msra.mxu0 %v932_v45 }
  0x34   :  { %958 = vmatprep.subr.bf16.mxu0 %v1112_v0 }
  0x35   :  { %957 = vmatpush3.bf16.msra.mxu1 %v956_v50  ;;  %v322_v50 = vld [vmem:[#allocation2 + $0x1f8] sm:$0xff] }
  0x36   :  { %733 = vmatmul.mubr.f32.vlgmr.msra.gmra.mrb[0].mxu0 %v29_v47  ;;  %982 = vmatprep.subr.bf16.mxu1 %v1112_v0  ;;  %v1004_v51 = vpack.c.bf16 %v322_v50, %v321_v49  ;;  %v506_v49 = vld [vmem:[#allocation2 + $0x2f8] sm:$0xff] }
  0x37   :  { %802 = vmatprep.mubr.msk.f32.mxu0 %vm1113_vm0, %v1114_v1  ;;  %960 = vmatpush3.bf16.msra.mxu0 %v959_v54  ;;  %v401_v54 = vld [vmem:[#allocation2 + $0x210] sm:$0xff] }
  0x38   :  { %961 = vmatprep.subr.bf16.mxu0 %v1112_v0 }
  0x3b   :  { %963 = vmatpush3.bf16.msra.mxu0 %v962_v56  ;;  %v402_v56 = vld [vmem:[#allocation2 + $0x218] sm:$0xff] }
  0x3c   :  { %964 = vmatprep.subr.bf16.mxu0 %v1112_v0  ;;  %v1010_v57 = vpack.c.bf16 %v402_v56, %v401_v54  ;;  %v509_v56 = vsub.s32 5, %v1182_v11 }
  0x3f   :  { %966 = vmatpush3.bf16.msra.mxu0 %v965_v59  ;;  %v404_v59 = vld [vmem:[#allocation2 + $0x228] sm:$0xff] }
  0x40   :  { %967 = vmatprep.subr.bf16.mxu0 %v1112_v0  ;;  %v1013_v60 = vpack.c.bf16 %v404_v59, %v403_v58 }
  0x43   :  { %969 = vmatpush3.bf16.msra.mxu0 %v968_v62  ;;  %v406_v62 = vld [vmem:[#allocation2 + $0x238] sm:$0xff] }
  0x44   :  { %970 = vmatprep.subr.bf16.mxu0 %v1112_v0  ;;  %v1016_v63 = vpack.c.bf16 %v406_v62, %v405_v61 }
  0x47   :  { %972 = vmatpush3.bf16.msra.mxu0 %v971_v3  ;;  %v408_v3 = vld [vmem:[#allocation2 + $0x248] sm:$0xff] }
  0x48   :  { %973 = vmatprep.subr.bf16.mxu0 %v1112_v0  ;;  %v1019_v4 = vpack.c.bf16 %v408_v3, %v407_v2 }
  0x4b   :  { %975 = vmatpush3.bf16.msra.mxu0 %v974_v6  ;;  %v410_v6 = vld [vmem:[#allocation2 + $0x258] sm:$0xff] }
  0x4c   :  { %976 = vmatprep.subr.bf16.mxu0 %v1112_v0  ;;  %v1022_v7 = vpack.c.bf16 %v410_v6, %v409_v5 }
  0x4f   :  { %978 = vmatpush3.bf16.msra.mxu0 %v977_v9  ;;  %v412_v9 = vld [vmem:[#allocation2 + $0x268] sm:$0xff] }
  0x50   :  { %979 = vmatprep.subr.bf16.mxu0 %v1112_v0  ;;  %v1025_v10 = vpack.c.bf16 %v412_v9, %v411_v8 }
  0x53   :  { %981 = vmatpush3.bf16.msra.mxu0 %v980_v21  ;;  %v1028_v21 = vpack.c.bf16 %v414_v20, %v413_v19 }
  0x54   :  { %1006 = vmatprep.subr.bf16.mxu0 %v1112_v0 }
 0x109   :  { %v117_v15 = vpop.f32.mrb[0].mxu0 }
 0x10a   :  { %v118_v16 = vadd.f32 %v117_v15, %v50_v14  ;;  %v734_v17 = vpop.f32.mrb[1].mxu0  ;;  %v234_v14 = vrot.slane %v1188_v13, %v233_v12 }
 0x10c   :  { %v121_v18 = vmax.f32 %v118_v16, 0.0 }
 0x10e   :  { %768 = vmatmul.mubr.f32.vlgmr.msra.gmra.mrb[0].mxu1 %v121_v18 }
 0x10f   :  { %837 = vmatprep.mubr.msk.f32.mxu1 %vm1113_vm0, %v1114_v1  ;;  %984 = vmatpush3.bf16.msra.mxu1 %v983_v25  ;;  %v1031_v25 = vpack.c.bf16 %v492_v23, %v491_v22 }
 0x110   :  { %985 = vmatprep.subr.bf16.mxu1 %v1112_v0 }
 0x113   :  { %987 = vmatpush3.bf16.msra.mxu1 %v986_v27  ;;  %v1034_v27 = vpack.c.bf16 %v494_v26, %v493_v24 }
 0x114   :  { %988 = vmatprep.subr.bf16.mxu1 %v1112_v0 }
 0x117   :  { %990 = vmatpush3.bf16.msra.mxu1 %v989_v30  ;;  %v1037_v30 = vpack.c.bf16 %v496_v29, %v495_v28 }
 0x118   :  { %991 = vmatprep.subr.bf16.mxu1 %v1112_v0 }
 0x11b   :  { %993 = vmatpush3.bf16.msra.mxu1 %v992_v33  ;;  %v499_v33 = vld [vmem:[#allocation2 + $0x2c0] sm:$0xff] }
 0x11c   :  { %994 = vmatprep.subr.bf16.mxu1 %v1112_v0  ;;  %v1043_v35 = vpack.c.bf16 %v500_v34, %v499_v33 }
 0x11f   :  { %996 = vmatpush3.bf16.msra.mxu1 %v995_v36  ;;  %v501_v36 = vld [vmem:[#allocation2 + $0x2d0] sm:$0xff] }
 0x120   :  { %997 = vmatprep.subr.bf16.mxu1 %v1112_v0  ;;  %v1046_v38 = vpack.c.bf16 %v502_v37, %v501_v36 }
 0x123   :  { %999 = vmatpush3.bf16.msra.mxu1 %v998_v39  ;;  %v503_v39 = vld [vmem:[#allocation2 + $0x2e0] sm:$0xff] }
 0x124   :  { %1000 = vmatprep.subr.bf16.mxu1 %v1112_v0  ;;  %v1049_v41 = vpack.c.bf16 %v504_v40, %v503_v39 }
 0x127   :  { %1002 = vmatpush3.bf16.msra.mxu1 %v1001_v42  ;;  %v325_v42 = vsub.s32 3, %v1182_v11 }
 0x128   :  { %1003 = vmatprep.subr.bf16.mxu1 %v1112_v0 }
 0x129   :  { %v326_v43 = vrot.slane %v1188_v13, %v325_v42 }
 0x12b   :  { %1005 = vmatpush3.bf16.msra.mxu1 %v1004_v51  ;;  %v417_v51 = vsub.s32 4, %v1182_v11 }
 0x12c   :  { %1030 = vmatprep.subr.bf16.mxu1 %v1112_v0 }
 0x12d   :  { %v418_v52 = vrot.slane %v1188_v13, %v417_v51 }
 0x1e1   :  { %v209_v45 = vpop.f32.mrb[0].mxu1 }
 0x1e2   :  { %v210_v46 = vadd.f32 %v209_v45, %v142_v44  ;;  %v769_v47 = vpop.f32.mrb[1].mxu1 }
 0x1e4   :  { %v213_v48 = vmax.f32 %v210_v46, 0.0 }
 0x1e6   :  { %803 = vmatmul.mubr.f32.vlgmr.msra.gmra.mrb[2].mxu0 %v213_v48  ;;  %v505_v48 = vld [vmem:[#allocation2 + $0x2f0] sm:$0xff] }
 0x1e7   :  { %872 = vmatprep.mubr.msk.f32.mxu0 %vm1113_vm0, %v1114_v1  ;;  %1008 = vmatpush3.bf16.msra.mxu0 %v1007_v55  ;;  %v1052_v50 = vpack.c.bf16 %v506_v49, %v505_v48 }
 0x1e8   :  { %1009 = vmatprep.subr.bf16.mxu0 %v1112_v0 }
 0x1eb   :  { %1011 = vmatpush3.bf16.msra.mxu0 %v1010_v57  ;;  %v510_v57 = vrot.slane %v1188_v13, %v509_v56 }
 0x1ec   :  { %1012 = vmatprep.subr.bf16.mxu0 %v1112_v0 }
 0x1ef   :  { %1014 = vmatpush3.bf16.msra.mxu0 %v1013_v60 }
 0x1f0   :  { %1015 = vmatprep.subr.bf16.mxu0 %v1112_v0 }
 0x1f3   :  { %1017 = vmatpush3.bf16.msra.mxu0 %v1016_v63 }
 0x1f4   :  { %1018 = vmatprep.subr.bf16.mxu0 %v1112_v0 }
 0x1f7   :  { %1020 = vmatpush3.bf16.msra.mxu0 %v1019_v4 }
 0x1f8   :  { %1021 = vmatprep.subr.bf16.mxu0 %v1112_v0 }
 0x1fb   :  { %1023 = vmatpush3.bf16.msra.mxu0 %v1022_v7 }
 0x1fc   :  { %1024 = vmatprep.subr.bf16.mxu0 %v1112_v0 }
 0x1ff   :  { %1026 = vmatpush3.bf16.msra.mxu0 %v1025_v10 }
 0x200   :  { %1027 = vmatprep.subr.bf16.mxu0 %v1112_v0 }
 0x203   :  { %1029 = vmatpush3.bf16.msra.mxu0 %v1028_v21 }
 0x2b9   :  { %v301_v15 = vpop.f32.mrb[2].mxu0 }
 0x2ba   :  { %v302_v16 = vadd.f32 %v301_v15, %v234_v14  ;;  %v804_v17 = vpop.f32.mrb[3].mxu0 }
 0x2bc   :  { %v305_v18 = vmax.f32 %v302_v16, 0.0 }
 0x2be   :  { %838 = vmatmul.mubr.f32.vlgmr.msra.gmra.mrb[2].mxu1 %v305_v18 }
 0x2bf   :  { %907 = vmatprep.mubr.msk.f32.mxu1 %vm1113_vm0, %v1114_v1  ;;  %1032 = vmatpush3.bf16.msra.mxu1 %v1031_v25  ;;  %v497_v1 = vld [vmem:[#allocation2 + $0x2b0] sm:$0xff] }
 0x2c0   :  { %1033 = vmatprep.subr.bf16.mxu1 %v1112_v0  ;;  %v1040_v32 = vpack.c.bf16 %v498_v31, %v497_v1 }
 0x2c3   :  { %1035 = vmatpush3.bf16.msra.mxu1 %v1034_v27 }
 0x2c4   :  { %1036 = vmatprep.subr.bf16.mxu1 %v1112_v0 }
 0x2c7   :  { %1038 = vmatpush3.bf16.msra.mxu1 %v1037_v30 }
 0x2c8   :  { %1039 = vmatprep.subr.bf16.mxu1 %v1112_v0 }
 0x2cb   :  { %1041 = vmatpush3.bf16.msra.mxu1 %v1040_v32 }
 0x2cc   :  { %1042 = vmatprep.subr.bf16.mxu1 %v1112_v0 }
 0x2cf   :  { %1044 = vmatpush3.bf16.msra.mxu1 %v1043_v35 }
 0x2d0   :  { %1045 = vmatprep.subr.bf16.mxu1 %v1112_v0 }
 0x2d3   :  { %1047 = vmatpush3.bf16.msra.mxu1 %v1046_v38 }
 0x2d4   :  { %1048 = vmatprep.subr.bf16.mxu1 %v1112_v0 }
 0x2d7   :  { %1050 = vmatpush3.bf16.msra.mxu1 %v1049_v41 }
 0x2d8   :  { %1051 = vmatprep.subr.bf16.mxu1 %v1112_v0 }
 0x2db   :  { %1053 = vmatpush3.bf16.msra.mxu1 %v1052_v50 }
 0x391   :  { %v393_v44 = vpop.f32.mrb[2].mxu1 }
 0x392   :  { %v394_v45 = vadd.f32 %v393_v44, %v326_v43  ;;  %v839_v46 = vpop.f32.mrb[3].mxu1 }
 0x394   :  { %v397_v47 = vmax.f32 %v394_v45, 0.0 }
 0x396   :  { %873 = vmatmul.mubr.f32.vlgmr.msra.gmra.mrb[4].mxu0 %v397_v47 }
 0x469   :  { %v485_v53 = vpop.f32.mrb[4].mxu0 }
 0x46a   :  { %v486_v54 = vadd.f32 %v485_v53, %v418_v52  ;;  %v874_v0 = vpop.f32.mrb[5].mxu0 }
 0x46c   :  { %v489_v55 = vmax.f32 %v486_v54, 0.0 }
 0x46e   :  { %908 = vmatmul.mubr.f32.vlgmr.msra.gmra.mrb[4].mxu1 %v489_v55 }
 0x541   :  { %v577_v58 = vpop.f32.mrb[4].mxu1 }
 0x542   :  { %v578_v59 = vadd.f32 %v577_v58, %v510_v57  ;;  %v909_v60 = vpop.f32.mrb[5].mxu1 }
 0x544   :  { %v581_v61 = vmax.f32 %v578_v59, 0.0 }
 0x546   :  { %582 = vst [vmem:[#allocation5] sm:$0xff] %v581_v61 }
 0x547   :  { %1094 = shalt.err (!%p1091_p12)
}
 0x548   :  { %s1095_s5 = scalar_lea.hbm %s1245_s3, 128 }
 0x549   :  { %p1096_p13 = scmp.ne.s32.totalorder %s1245_s3, %s1095_s5  ;;  %p1099_p0 = scmp.lt.u32.totalorder %s1095_s5, %s1245_s3 }
 0x54b   :  { %p1101_p1 = pnand %p1099_p0, %p1096_p13 }
 0x54d   :  { %1104 = shalt.err (!%p1101_p1)
}
 0x54e   :  { %592 = dma.vmem_to_hbm [thread:$0]  %s590_s28, 128, %s1245_s3, [#allocation4]  }
 0x54f   :  { %1107 = dma.done.wait [#allocation4], 128  }
 0x550   :  { %1108 = vsyncadd [#allocation4], 4294967168 }
 0x551   :  { %596 = vsyncpa [#allocation3], 1 }
 0x552   :  { %597 = vsyncpa [#allocation4], 1 }

</bundles_post_ra>
